<compile_context>
chip_gen: v6e
topology: v6e:2x2x1
jax: 0.10.0
libtpu: 0.0.40
codegen_flags: <defaults>
</compile_context>

<pallas_src>
import jax
import jax.numpy as jnp
from jax.experimental import pallas as pl
from jax.experimental.pallas import tpu as pltpu


NEG_SLOPE = 0.01   # F.leaky_relu default negative_slope
IN = 4             # input features
H = 100            # true hidden width
HP = 128           # padded hidden width (lane multiple)
OUT = 2            # output width (NOT lane padded; stored as-is)


def _leaky_relu(x):
    return jnp.where(x >= 0, x, NEG_SLOPE * x)


def _round_up(n, m):
    return ((n + m - 1) // m) * m


def policynet_kernel(x_ref, w1_ref, b1_ref, w2_ref, b2_ref, w3_ref, b3_ref, o_ref):
    x = x_ref[...]                                                   # (tb, 4)  f32

    # fc1: (tb,4)bf16 @ (4,128)bf16 -> f32 acc, bias + leaky_relu in f32.
    h1 = jnp.dot(x.astype(jnp.bfloat16), w1_ref[...],
                 preferred_element_type=jnp.float32) + b1_ref[...]
    h1 = _leaky_relu(h1)

    # fc2: (tb,128)bf16 @ (128,128)bf16 -> f32 acc.
    h2 = jnp.dot(h1.astype(jnp.bfloat16), w2_ref[...],
                 preferred_element_type=jnp.float32) + b2_ref[...]
    h2 = _leaky_relu(h2)

    # fc3: (tb,128)bf16 @ (128,2)bf16 -> (tb,2) f32, no activation.
    out = jnp.dot(h2.astype(jnp.bfloat16), w3_ref[...],
                  preferred_element_type=jnp.float32) + b3_ref[...]

    o_ref[...] = out.astype(o_ref.dtype)


def pad_params(params):
    """Zero-pad hidden width 100 -> 128 and cast weights to bf16.

    Padded rows/cols/bias lanes are zero, so they contribute nothing through
    leaky_relu (leaky_relu(0)=0) or the downstream matmuls. Biases stay f32
    (they are added to the f32 accumulator).
    """
    w1, b1, w2, b2, w3, b3 = params
    w1p = jnp.zeros((IN, HP), jnp.float32).at[:, :H].set(w1).astype(jnp.bfloat16)
    b1p = jnp.zeros((1, HP), jnp.float32).at[:, :H].set(b1)
    w2p = jnp.zeros((HP, HP), jnp.float32).at[:H, :H].set(w2).astype(jnp.bfloat16)
    b2p = jnp.zeros((1, HP), jnp.float32).at[:, :H].set(b2)
    w3p = jnp.zeros((HP, OUT), jnp.float32).at[:H, :].set(w3).astype(jnp.bfloat16)
    b3p = b3.astype(jnp.float32).reshape(1, OUT)
    return (w1p, b1p, w2p, b2p, w3p, b3p)


def policynet_forward(x, padded_params, *, max_batch_tile=2048):
    """x: (B, 4) float32 -> (B, 2) float32. padded_params from pad_params()."""
    w1, b1, w2, b2, w3, b3 = padded_params
    B = x.shape[0]

    # Batch tile: multiple of 8 (sublane), capped; for B >= 16 guarantee at
    # least 2 grid steps so megacore ("parallel") can shard across v7x TCs.
    tb = min(max_batch_tile, _round_up(B, 8))
    if B >= 16:
        tb = min(tb, _round_up((B + 1) // 2, 8))
    tb = max(tb, 8)
    grid = (pl.cdiv(B, tb),)   # no wrapper pad; Pallas masks the edge block

    # Streaming arrays: tiled over the batch axis (auto double-buffered).
    x_spec = pl.BlockSpec((tb, IN), lambda i: (i, 0))
    out_spec = pl.BlockSpec((tb, OUT), lambda i: (i, 0))
    # Weights/biases: constant block index -> fetched once, VMEM-resident (~35 KiB).
    const = lambda a: pl.BlockSpec(a.shape, lambda i: (0, 0))

    flops = 2 * B * (IN * HP + HP * HP + HP * OUT)
    bytes_accessed = (
        4 * B * IN                                   # x (f32)
        + 2 * (IN * HP + HP * HP + HP * OUT)         # bf16 weights
        + 4 * (HP + HP + OUT)                        # f32 biases
        + 4 * B * OUT                                # output (f32)
    )

    out = pl.pallas_call(
        policynet_kernel,
        out_shape=jax.ShapeDtypeStruct((B, OUT), jnp.float32),
        grid=grid,
        in_specs=[x_spec, const(w1), const(b1), const(w2), const(b2),
                  const(w3), const(b3)],
        out_specs=out_spec,
        compiler_params=pltpu.CompilerParams(
            dimension_semantics=("parallel",),   # v7x: shard batch tiles over 2 TCs
            vmem_limit_bytes=32 << 20,           # above v5e's 16 MiB scoped default
        ),
        cost_estimate=pl.CostEstimate(
            flops=flops, bytes_accessed=bytes_accessed, transcendentals=0),
    )(x, w1, b1, w2, b2, w3, b3)

    return out


def init_params(key):
    """Deterministic init matching the module's __init__ (unpadded shapes).

    Weights: xavier_normal_ (gain=1), stored as (in, out).
    Biases: PyTorch Linear default, uniform(-1/sqrt(fan_in), 1/sqrt(fan_in)).
    """
    ks = jax.random.split(key, 6)

    def xavier_normal(k, fan_in, fan_out):
        std = (2.0 / (fan_in + fan_out)) ** 0.5
        return std * jax.random.normal(k, (fan_in, fan_out), dtype=jnp.float32)

    def bias(k, fan_in, fan_out):
        bound = 1.0 / (fan_in ** 0.5)
        return jax.random.uniform(
            k, (1, fan_out), dtype=jnp.float32, minval=-bound, maxval=bound
        )

    w1 = xavier_normal(ks[0], IN, H)
    b1 = bias(ks[1], IN, H)
    w2 = xavier_normal(ks[2], H, H)
    b2 = bias(ks[3], H, H)
    w3 = xavier_normal(ks[4], H, OUT)
    b3 = bias(ks[5], H, OUT)
    return (w1, b1, w2, b2, w3, b3)


def policynet_ref(x, params, operand_dtype=jnp.float32):
    """Pure-JAX reference (unpadded). operand_dtype=bf16 mirrors kernel math."""
    w1, b1, w2, b2, w3, b3 = params

    def mm(a, w):
        return jnp.dot(a.astype(operand_dtype), w.astype(operand_dtype),
                       preferred_element_type=jnp.float32)

    h1 = _leaky_relu(mm(x, w1) + b1)
    h2 = _leaky_relu(mm(h1, w2) + b2)
    return mm(h2, w3) + b3


if __name__ == "__main__":
    key = jax.random.PRNGKey(0)
    k_param, k_x = jax.random.split(key)

    params = init_params(k_param)
    padded = pad_params(params)

    # Small CartPole-like batch of states.
    x = jax.random.normal(k_x, (8, 4), dtype=jnp.float32)

    out = policynet_forward(x, padded)
    jax.block_until_ready(out)
    assert out.shape == (8, 2), out.shape

    # Tight check against a reference that uses the same bf16 matmul operands.
    ref_bf16 = policynet_ref(x, params, operand_dtype=jnp.bfloat16)
    assert jnp.allclose(out, ref_bf16, atol=1e-3, rtol=1e-3), "mismatch vs bf16 ref"
    # Loose check against the full-f32 reference (bf16 operand rounding only).
    ref_f32 = policynet_ref(x, params, operand_dtype=jnp.float32)
    assert jnp.allclose(out, ref_f32, atol=5e-2, rtol=5e-2), "mismatch vs f32 ref"

    # Non-multiple-of-tile batch: exercises the masked edge block and the
    # >=2-grid-step megacore split path.
    x2 = jax.random.normal(jax.random.PRNGKey(3), (37, 4), dtype=jnp.float32)
    out2 = policynet_forward(x2, padded)
    jax.block_until_ready(out2)
    assert out2.shape == (37, 2), out2.shape
    assert jnp.allclose(out2, policynet_ref(x2, params, jnp.bfloat16),
                        atol=1e-3, rtol=1e-3)

    print("KERNEL_OK")
</pallas_src>

<mosaic_0001>
module attributes {stable_mosaic.version = 11 : i64} {
  func.func @policynet_kernel(%arg0: i32, %arg1: memref<8x4xf32, #tpu.memory_space<vmem>>, %arg2: memref<4x128xbf16, #tpu.memory_space<vmem>>, %arg3: memref<1x128xf32, #tpu.memory_space<vmem>>, %arg4: memref<128x128xbf16, #tpu.memory_space<vmem>>, %arg5: memref<1x128xf32, #tpu.memory_space<vmem>>, %arg6: memref<128x2xbf16, #tpu.memory_space<vmem>>, %arg7: memref<1x2xf32, #tpu.memory_space<vmem>>, %arg8: memref<8x2xf32, #tpu.memory_space<vmem>>) attributes {dimension_semantics = [#tpu.dimension_semantics<parallel>], iteration_bounds = array<i64: 1>, scalar_prefetch = 0 : i64, scratch_operands = 0 : i64, tpu.core_type = #tpu.core_type<tc>, window_params = [{transform_indices = @transform_0, window_bounds = array<i64: 8, 4>}, {pipeline_mode = #tpu.pipeline_mode<synchronous>, transform_indices = @transform_1, window_bounds = array<i64: 4, 128>}, {pipeline_mode = #tpu.pipeline_mode<synchronous>, transform_indices = @transform_2, window_bounds = array<i64: 1, 128>}, {pipeline_mode = #tpu.pipeline_mode<synchronous>, transform_indices = @transform_3, window_bounds = array<i64: 128, 128>}, {pipeline_mode = #tpu.pipeline_mode<synchronous>, transform_indices = @transform_4, window_bounds = array<i64: 1, 128>}, {pipeline_mode = #tpu.pipeline_mode<synchronous>, transform_indices = @transform_5, window_bounds = array<i64: 128, 2>}, {pipeline_mode = #tpu.pipeline_mode<synchronous>, transform_indices = @transform_6, window_bounds = array<i64: 1, 2>}, {transform_indices = @transform_7, window_bounds = array<i64: 8, 2>}]} {
    %c0 = arith.constant 0 : index
    %c0_0 = arith.constant 0 : index
    %0 = vector.load %arg1[%c0, %c0_0] : memref<8x4xf32, #tpu.memory_space<vmem>>, vector<8x4xf32>
    %1 = arith.truncf %0 : vector<8x4xf32> to vector<8x4xbf16>
    %c0_1 = arith.constant 0 : index
    %c0_2 = arith.constant 0 : index
    %2 = vector.load %arg2[%c0_1, %c0_2] : memref<4x128xbf16, #tpu.memory_space<vmem>>, vector<4x128xbf16>
    %cst = arith.constant dense<0.000000e+00> : vector<8x128xf32>
    %3 = tpu.matmul %1, %2, %cst {dimension_numbers = #tpu.dot_dimension_numbers<[1], [0], [0], [1], [0, 0, 1, 1], [], []>} : vector<8x4xbf16>, vector<4x128xbf16>, vector<8x128xf32> -> vector<8x128xf32>
    %c0_3 = arith.constant 0 : index
    %c0_4 = arith.constant 0 : index
    %4 = vector.load %arg3[%c0_3, %c0_4] : memref<1x128xf32, #tpu.memory_space<vmem>>, vector<1x128xf32>
    %5 = vector.broadcast %4 : vector<1x128xf32> to vector<8x128xf32>
    %6 = arith.addf %3, %5 : vector<8x128xf32>
    %cst_5 = arith.constant 0.000000e+00 : f32
    %7 = vector.broadcast %cst_5 : f32 to vector<8x128xf32>
    %8 = arith.cmpf oge, %6, %7 : vector<8x128xf32>
    %cst_6 = arith.constant 0.00999999977 : f32
    %9 = vector.broadcast %cst_6 : f32 to vector<8x128xf32>
    %10 = arith.mulf %9, %6 : vector<8x128xf32>
    %11 = arith.select %8, %6, %10 : vector<8x128xi1>, vector<8x128xf32>
    %12 = arith.truncf %11 : vector<8x128xf32> to vector<8x128xbf16>
    %c0_7 = arith.constant 0 : index
    %c0_8 = arith.constant 0 : index
    %13 = vector.load %arg4[%c0_7, %c0_8] : memref<128x128xbf16, #tpu.memory_space<vmem>>, vector<128x128xbf16>
    %cst_9 = arith.constant dense<0.000000e+00> : vector<8x128xf32>
    %14 = tpu.matmul %12, %13, %cst_9 {dimension_numbers = #tpu.dot_dimension_numbers<[1], [0], [0], [1], [0, 0, 1, 1], [], []>} : vector<8x128xbf16>, vector<128x128xbf16>, vector<8x128xf32> -> vector<8x128xf32>
    %c0_10 = arith.constant 0 : index
    %c0_11 = arith.constant 0 : index
    %15 = vector.load %arg5[%c0_10, %c0_11] : memref<1x128xf32, #tpu.memory_space<vmem>>, vector<1x128xf32>
    %16 = vector.broadcast %15 : vector<1x128xf32> to vector<8x128xf32>
    %17 = arith.addf %14, %16 : vector<8x128xf32>
    %cst_12 = arith.constant 0.000000e+00 : f32
    %18 = vector.broadcast %cst_12 : f32 to vector<8x128xf32>
    %19 = arith.cmpf oge, %17, %18 : vector<8x128xf32>
    %cst_13 = arith.constant 0.00999999977 : f32
    %20 = vector.broadcast %cst_13 : f32 to vector<8x128xf32>
    %21 = arith.mulf %20, %17 : vector<8x128xf32>
    %22 = arith.select %19, %17, %21 : vector<8x128xi1>, vector<8x128xf32>
    %23 = arith.truncf %22 : vector<8x128xf32> to vector<8x128xbf16>
    %c0_14 = arith.constant 0 : index
    %c0_15 = arith.constant 0 : index
    %24 = vector.load %arg6[%c0_14, %c0_15] : memref<128x2xbf16, #tpu.memory_space<vmem>>, vector<128x2xbf16>
    %cst_16 = arith.constant dense<0.000000e+00> : vector<8x2xf32>
    %25 = tpu.matmul %23, %24, %cst_16 {dimension_numbers = #tpu.dot_dimension_numbers<[1], [0], [0], [1], [0, 0, 1, 1], [], []>} : vector<8x128xbf16>, vector<128x2xbf16>, vector<8x2xf32> -> vector<8x2xf32>
    %c0_17 = arith.constant 0 : index
    %c0_18 = arith.constant 0 : index
    %26 = vector.load %arg7[%c0_17, %c0_18] : memref<1x2xf32, #tpu.memory_space<vmem>>, vector<1x2xf32>
    %27 = vector.broadcast %26 : vector<1x2xf32> to vector<8x2xf32>
    %28 = arith.addf %25, %27 : vector<8x2xf32>
    %c0_19 = arith.constant 0 : index
    %c0_20 = arith.constant 0 : index
    %29 = vector.load %arg8[%c0_19, %c0_20] : memref<8x2xf32, #tpu.memory_space<vmem>>, vector<8x2xf32>
    tpu.vector_store %arg8[%c0_19, %c0_20], %28 {strides = array<i32>} : memref<8x2xf32, #tpu.memory_space<vmem>>, vector<8x2xf32>,
    return
  }
  func.func @transform_0(%arg0: i32) -> (i32, i32) {
    %c0_i32 = arith.constant 0 : i32
    %c0_i32_0 = arith.constant 0 : i32
    return %arg0, %c0_i32 : i32, i32
  }
  func.func @transform_1(%arg0: i32) -> (i32, i32) {
    %c0_i32 = arith.constant 0 : i32
    %c0_i32_0 = arith.constant 0 : i32
    %c0_i32_1 = arith.constant 0 : i32
    return %c0_i32, %c0_i32_0 : i32, i32
  }
  func.func @transform_2(%arg0: i32) -> (i32, i32) {
    %c0_i32 = arith.constant 0 : i32
    %c0_i32_0 = arith.constant 0 : i32
    %c0_i32_1 = arith.constant 0 : i32
    return %c0_i32, %c0_i32_0 : i32, i32
  }
  func.func @transform_3(%arg0: i32) -> (i32, i32) {
    %c0_i32 = arith.constant 0 : i32
    %c0_i32_0 = arith.constant 0 : i32
    %c0_i32_1 = arith.constant 0 : i32
    return %c0_i32, %c0_i32_0 : i32, i32
  }
  func.func @transform_4(%arg0: i32) -> (i32, i32) {
    %c0_i32 = arith.constant 0 : i32
    %c0_i32_0 = arith.constant 0 : i32
    %c0_i32_1 = arith.constant 0 : i32
    return %c0_i32, %c0_i32_0 : i32, i32
  }
  func.func @transform_5(%arg0: i32) -> (i32, i32) {
    %c0_i32 = arith.constant 0 : i32
    %c0_i32_0 = arith.constant 0 : i32
    %c0_i32_1 = arith.constant 0 : i32
    return %c0_i32, %c0_i32_0 : i32, i32
  }
  func.func @transform_6(%arg0: i32) -> (i32, i32) {
    %c0_i32 = arith.constant 0 : i32
    %c0_i32_0 = arith.constant 0 : i32
    %c0_i32_1 = arith.constant 0 : i32
    return %c0_i32, %c0_i32_0 : i32, i32
  }
  func.func @transform_7(%arg0: i32) -> (i32, i32) {
    %c0_i32 = arith.constant 0 : i32
    %c0_i32_0 = arith.constant 0 : i32
    return %arg0, %c0_i32 : i32, i32
  }
}

</mosaic_0001>

<bundles_post_ra>
// kernel: tpu_custom_call.1
= control target key start
LH: loop header
LB: loop body
LE: loop exit
PB: predicated region body
PF: predicated region fallthrough
CT: control target
= control target key end

     0   :  { %vm41_vm0 = vcmask 1041408   ;;  %v425_v0 = vmov 0.0   ;;  %vm426_vm1 = vmmov 0   ;;  %vm37_vm2 = vcmask 31744   ;;  %s556_s1 = inlined_call_operand.vmem [shape: bf16[4,128], index: 1, kind: input, shape index: {}]   ;;  %s557_s0 = inlined_call_operand.vmem [shape: f32[8,4], index: 0, kind: input, shape index: {}]   ;;  %s558_s3 = inlined_call_operand.vmem [shape: bf16[128,128], index: 3, kind: input, shape index: {}]   ;;  %s559_s5 = inlined_call_operand.vmem [shape: bf16[128,2], index: 5, kind: input, shape index: {}]   ;;  %s560_s2 = inlined_call_operand.vmem [shape: f32[1,128], index: 2, kind: input, shape index: {}]   ;;  %s561_s4 = inlined_call_operand.vmem [shape: f32[1,128], index: 4, kind: input, shape index: {}]   ;;  %s562_s6 = inlined_call_operand.vmem [shape: f32[1,2], index: 6, kind: input, shape index: {}]   ;;  %s563_s7 = inlined_call_operand.vmem [shape: f32[8,2], index: 7, kind: output, shape index: {}]  }
   0x1   :  { %361 = vmatprep.subr.bf16.mxu0 %v425_v0  ;;  %v29_v1 = vld [vmem:[%s556_s1] sm:$0x3]  ;;  %363 = vmatprep.mubr.msk.bf16.mxu0 %vm426_vm1, %v425_v0  ;;  %v409_v5 = vld [vmem:[%s558_s3 + $0x38] sm:$0xff]   ;;  %v410_v6 = vld [vmem:[%s558_s3 + $0x30] sm:$0xff]   ;;  %vm315_vm5 = vcmask 15360  }
   0x2   :  { %v27_v2 = vld [vmem:[%s557_s0] sm:$0xff]  ;;  %v43_v3 = vsel %vm41_vm0, %v29_v1, 0  ;;  %367 = vmatprep.subr.bf16.mxu1 %v425_v0  ;;  %383 = vmatprep.mubr.msk.bf16.mxu1 %vm426_vm1, %v425_v0  ;;  %v411_v7 = vld [vmem:[%s558_s3 + $0x28] sm:$0xff]   ;;  %v413_v9 = vld [vmem:[%s558_s3 + $0x18] sm:$0xff]  }
   0x3   :  { %v28_v4 = vpack.c.bf16 %v27_v2, %v27_v2  ;;  %362 = vmatpush3.bf16.msra.mxu0 %v43_v3  ;;  %368 = vmatpush3.bf16.msra.mxu1 %v409_v5  ;;  %v412_v8 = vld [vmem:[%s558_s3 + $0x20] sm:$0xff]   ;;  %v414_v10 = vld [vmem:[%s558_s3 + $0x10] sm:$0xff]   ;;  %v415_v11 = vld [vmem:[%s558_s3 + $0x8] sm:$0xff]  }
   0x4   :  { %387 = vmatprep.subr.bf16.mxu0 %v425_v0  ;;  %369 = vmatprep.subr.bf16.mxu1 %v425_v0  ;;  %v416_v12 = vld [vmem:[%s558_s3] sm:$0xff]   ;;  %v417_v13 = vld [vmem:[%s559_s5 + $0x38] sm:$0xff]   ;;  %v418_v14 = vld [vmem:[%s559_s5 + $0x30] sm:$0xff]  }
   0x5   :  { %v419_v15 = vld [vmem:[%s559_s5 + $0x28] sm:$0xff]   ;;  %v420_v16 = vld [vmem:[%s559_s5 + $0x20] sm:$0xff]   ;;  %v421_v17 = vld [vmem:[%s559_s5 + $0x18] sm:$0xff]  }
   0x6   :  { %364 = vmatmul.mubr.msk.bf16.vlgmr.msra.gmra.mxu0 %vm37_vm2, %v28_v4  ;;  %v422_v18 = vld [vmem:[%s559_s5 + $0x10] sm:$0xff]   ;;  %v321_v19 = vld [vmem:[%s560_s2] ss:$0 sm:$0xff]  ;;  %v423_v28 = vld [vmem:[%s559_s5 + $0x8] sm:$0xff]  }
   0x7   :  { %403 = vmatprep.mubr.msk.bf16.mxu0 %vm426_vm1, %v425_v0  ;;  %370 = vmatpush3.bf16.msra.mxu1 %v410_v6  ;;  %v424_v29 = vld [vmem:[%s559_s5] sm:$0xff]  }
   0x8   :  { %371 = vmatprep.subr.bf16.mxu1 %v425_v0  ;;  %388 = vmatpush3.bf16.msra.mxu0 %v417_v13  ;;  %v323_v30 = vld [vmem:[%s561_s4] ss:$0 sm:$0xff] }
   0x9   :  { %389 = vmatprep.subr.bf16.mxu0 %v425_v0  ;;  %v332_v39 = vld [vmem:[%s562_s6] ss:$0 sm:$0xff] }
   0xb   :  { %372 = vmatpush3.bf16.msra.mxu1 %v411_v7 }
   0xc   :  { %373 = vmatprep.subr.bf16.mxu1 %v425_v0  ;;  %390 = vmatpush3.bf16.msra.mxu0 %v418_v14 }
   0xd   :  { %391 = vmatprep.subr.bf16.mxu0 %v425_v0 }
   0xf   :  { %374 = vmatpush3.bf16.msra.mxu1 %v412_v8 }
  0x10   :  { %375 = vmatprep.subr.bf16.mxu1 %v425_v0  ;;  %392 = vmatpush3.bf16.msra.mxu0 %v419_v15 }
  0x11   :  { %393 = vmatprep.subr.bf16.mxu0 %v425_v0 }
  0x13   :  { %376 = vmatpush3.bf16.msra.mxu1 %v413_v9 }
  0x14   :  { %377 = vmatprep.subr.bf16.mxu1 %v425_v0  ;;  %394 = vmatpush3.bf16.msra.mxu0 %v420_v16 }
  0x15   :  { %395 = vmatprep.subr.bf16.mxu0 %v425_v0 }
  0x17   :  { %378 = vmatpush3.bf16.msra.mxu1 %v414_v10 }
  0x18   :  { %379 = vmatprep.subr.bf16.mxu1 %v425_v0  ;;  %396 = vmatpush3.bf16.msra.mxu0 %v421_v17 }
  0x19   :  { %397 = vmatprep.subr.bf16.mxu0 %v425_v0 }
  0x1b   :  { %380 = vmatpush3.bf16.msra.mxu1 %v415_v11 }
  0x1c   :  { %381 = vmatprep.subr.bf16.mxu1 %v425_v0  ;;  %398 = vmatpush3.bf16.msra.mxu0 %v422_v18 }
  0x1d   :  { %399 = vmatprep.subr.bf16.mxu0 %v425_v0 }
  0x1f   :  { %382 = vmatpush3.bf16.msra.mxu1 %v416_v12 }
  0x20   :  { %400 = vmatpush3.bf16.msra.mxu0 %v423_v28 }
  0x21   :  { %401 = vmatprep.subr.bf16.mxu0 %v425_v0 }
  0x24   :  { %402 = vmatpush3.bf16.msra.mxu0 %v424_v29 }
  0xc6   :  { %v79_v20 = vpop.f32.mrf.mxu0 }
  0xc7   :  { %v80_v21 = vadd.f32 %v321_v19, %v79_v20 }
  0xc8   :  { %v365_v22 = vpop.f32.mrf.mxu0 }
  0xc9   :  { %vm85_vm3 = vcmp.ge.f32.partialorder %v80_v21, 0.0  ;;  %v86_v23 = vmul.f32 0.01, %v80_v21 }
  0xca   :  { %v82_v24 = vpop.f32.mrf.mxu0 }
  0xcb   :  { %v87_v25 = vsel %vm85_vm3, %v80_v21, %v86_v23 }
  0xcc   :  { %v366_v26 = vpop.f32.mrf.mxu0  ;;  %v88_v27 = vpack.c.bf16 %v87_v25, %v87_v25 }
  0xce   :  { %384 = vmatmul.mubr.bf16.vlgmr.msra.gmra.mxu1 %v88_v27 }
 0x18e   :  { %v194_v31 = vpop.f32.mrf.mxu1 }
 0x18f   :  { %v195_v32 = vadd.f32 %v323_v30, %v194_v31 }
 0x190   :  { %v385_v33 = vpop.f32.mrf.mxu1 }
 0x191   :  { %vm200_vm4 = vcmp.ge.f32.partialorder %v195_v32, 0.0  ;;  %v201_v34 = vmul.f32 0.01, %v195_v32 }
 0x192   :  { %v197_v35 = vpop.f32.mrf.mxu1 }
 0x193   :  { %v202_v36 = vsel %vm200_vm4, %v195_v32, %v201_v34 }
 0x194   :  { %v203_v37 = vpack.c.bf16 %v202_v36, %v202_v36  ;;  %v386_v38 = vpop.f32.mrf.mxu1 }
 0x196   :  { %404 = vmatmul.mubr.bf16.vlgmr.msra.gmra.mxu0 %v203_v37 }
 0x256   :  { %v309_v40 = vpop.f32.mrf.mxu0 }
 0x257   :  { %v310_v41 = vadd.f32 %v332_v39, %v309_v40 }
 0x258   :  { %v405_v42 = vpop.f32.mrf.mxu0 }
 0x259   :  { %316 = vst.msk [vmem:[%s563_s7] sm:$0xff] %vm315_vm5, %v310_v41 }
 0x25a   :  { %v312_v43 = vpop.f32.mrf.mxu0 }
 0x25c   :  { %v406_v44 = vpop.f32.mrf.mxu0 }

</bundles_post_ra>
